<compile_context>
chip_gen: v6e
topology: v6e:2x2x1
jax: 0.10.0
libtpu: 0.0.40
codegen_flags: <defaults>
</compile_context>

<pallas_src>
import jax
import jax.numpy as jnp
from jax import lax
from jax.experimental import pallas as pl
from jax.experimental.pallas import tpu as pltpu

_LANE = 128


def _cdiv(a, b):
    return -(-a // b)


def _round_up(x, m):
    return _cdiv(x, m) * m


def _phys_vmem_bytes():
    try:
        return int(pltpu.get_tpu_info().vmem_capacity_bytes)
    except Exception:
        return 64 << 20  # conservative: v7x per-TensorCore VMEM


def _vmem_limit_bytes(phys):
    # Raise the scoped VMEM limit on v5e/v6e (defaults 16/32 MiB of 128 MiB
    # physical); stay well below physical on v7x (64 MiB).
    return max(32 << 20, min(phys - (16 << 20), 96 << 20))


def _sublane_mult(dtype):
    return {4: 8, 2: 16, 1: 32}.get(jnp.dtype(dtype).itemsize, 8)


def _choose_tiles(R, HW, dtype):
    """Pick (row_tile, hw_tile, R_pad, HW_pad, phys_vmem) from a VMEM budget."""
    phys = _phys_vmem_bytes()
    # Double-buffered input stream: at most half of physical VMEM, capped at
    # 32 MiB total (16 MiB per buffer) so v7x keeps pipelining headroom.
    per_buf = max((min(phys // 2, 32 << 20)) // 2, 1 << 20)
    itemsize = jnp.dtype(dtype).itemsize
    max_elems = per_buf // itemsize
    sub = _sublane_mult(dtype)

    # H*W tile: cover the whole (128-padded) extent in one step if it fits
    # next to a minimal row tile; otherwise split evenly into 128-multiples
    # (keeps HW padding small).
    HW_128 = _round_up(HW, _LANE)
    hw_cap = max(_LANE, ((max_elems // sub) // _LANE) * _LANE)
    n_hw = _cdiv(HW_128, hw_cap)
    hw_tile = _round_up(_cdiv(HW_128, n_hw), _LANE)
    HW_pad = n_hw * hw_tile

    # Row tile: as many rows as fit next to hw_tile, but keep >= 2 row tiles
    # when possible so the "parallel" row axis can be sharded across the two
    # TensorCores of a v7x chip.
    row_cap = max(sub, (max_elems // hw_tile) // sub * sub)
    R_sub = _round_up(R, sub)
    if R_sub >= 2 * sub:
        row_cap = min(row_cap, max(sub, _round_up(_cdiv(R_sub, 2), sub)))
    n_rows = _cdiv(R_sub, row_cap)
    row_tile = _round_up(_cdiv(R_sub, n_rows), sub)
    R_pad = n_rows * row_tile
    return row_tile, hw_tile, R_pad, HW_pad, phys


def _make_kernel(want_avg, want_max, hw, hw_tile, hw_padded):
    """Build a kernel computing global mean and/or max per row, tiled over HW."""

    def kernel(x_ref, *refs):
        refs = list(refs)
        avg_ref = refs.pop(0) if want_avg else None
        max_ref = refs.pop(0) if want_max else None
        sum_acc = refs.pop(0) if want_avg else None
        max_acc = refs.pop(0) if want_max else None

        k = pl.program_id(1)

        @pl.when(k == 0)
        def _():
            if want_avg:
                sum_acc[...] = jnp.zeros_like(sum_acc)
            if want_max:
                max_acc[...] = jnp.full_like(max_acc, -jnp.inf)

        xf = x_ref[...].astype(jnp.float32)

        if want_avg:
            # HW padding is zeros -> neutral for the sum; divide by real HW.
            sum_acc[...] += jnp.sum(xf, axis=-1, keepdims=True)

        if want_max:
            if hw_padded:
                col = k * hw_tile + lax.broadcasted_iota(jnp.int32, (1, hw_tile), 1)
                xm = jnp.where(col < hw, xf, -jnp.inf)
            else:
                xm = xf
            max_acc[...] = jnp.maximum(
                max_acc[...], jnp.max(xm, axis=-1, keepdims=True))

        @pl.when(k == pl.num_programs(1) - 1)
        def _():
            if want_avg:
                avg_ref[...] = (sum_acc[...] * (1.0 / hw)).astype(avg_ref.dtype)
            if want_max:
                max_ref[...] = max_acc[...].astype(max_ref.dtype)

    return kernel


def _global_pool(x2d, want_avg, want_max):
    """x2d: (R, HW). Returns dict with 'avg'/'max' entries, each (R, 1)."""
    R, HW = x2d.shape
    dtype = x2d.dtype
    row_tile, hw_tile, R_pad, HW_pad, phys = _choose_tiles(R, HW, dtype)

    if R_pad != R or HW_pad != HW:
        x2d = jnp.pad(x2d, ((0, R_pad - R), (0, HW_pad - HW)))

    n_rows = R_pad // row_tile
    n_hw = HW_pad // hw_tile

    out_shape = []
    out_specs = []
    scratch = []
    if want_avg:
        out_shape.append(jax.ShapeDtypeStruct((R_pad, 1), dtype))
        out_specs.append(pl.BlockSpec((row_tile, 1), lambda i, k: (i, 0)))
    if want_max:
        out_shape.append(jax.ShapeDtypeStruct((R_pad, 1), dtype))
        out_specs.append(pl.BlockSpec((row_tile, 1), lambda i, k: (i, 0)))
    if want_avg:
        scratch.append(pltpu.VMEM((row_tile, 1), jnp.float32))
    if want_max:
        scratch.append(pltpu.VMEM((row_tile, 1), jnp.float32))

    kernel = _make_kernel(want_avg, want_max, HW, hw_tile, HW_pad != HW)

    # TODO(synk): if a tight VMEM budget ever forces very small hw_tile,
    # pipeline_mode=pl.Buffered(3) on the input spec could hide DMA issue
    # latency; tiles here are sized to multiple MiB so double-buffering is fine.
    outs = pl.pallas_call(
        kernel,
        out_shape=tuple(out_shape),
        grid_spec=pltpu.PrefetchScalarGridSpec(
            num_scalar_prefetch=0,
            grid=(n_rows, n_hw),
            in_specs=[pl.BlockSpec((row_tile, hw_tile), lambda i, k: (i, k))],
            out_specs=tuple(out_specs),
            scratch_shapes=scratch,
        ),
        compiler_params=pltpu.CompilerParams(
            dimension_semantics=("parallel", "arbitrary"),
            vmem_limit_bytes=_vmem_limit_bytes(phys),
        ),
    )(x2d)

    if not isinstance(outs, (tuple, list)):
        outs = (outs,)
    outs = list(outs)
    res = {}
    if want_avg:
        res["avg"] = outs.pop(0)[:R]
    if want_max:
        res["max"] = outs.pop(0)[:R]
    return res


class SelectiveAdaptivePool2d:
    """JAX/Pallas port of the PyTorch module (output_size=1 global pooling)."""

    def __init__(self, output_size=1, pool_type="avg", flatten=False):
        assert output_size == 1, "only global pooling (output_size=1) implemented"
        # TODO(synk): general adaptive pooling for output_size > 1 not implemented.
        assert pool_type in ("avg", "max", "avgmax", "catavgmax"), (
            "Invalid pool type: %s" % pool_type)
        self.output_size = output_size
        self.pool_type = pool_type
        self.flatten = flatten

    def feat_mult(self):
        return 2 if self.pool_type == "catavgmax" else 1

    def __call__(self, x):
        # x: (N, C, H, W)
        N, C, H, W = x.shape
        x2d = x.reshape(N * C, H * W)
        want_avg = self.pool_type in ("avg", "avgmax", "catavgmax")
        want_max = self.pool_type in ("max", "avgmax", "catavgmax")
        res = _global_pool(x2d, want_avg, want_max)

        if self.pool_type == "avg":
            out = res["avg"].reshape(N, C, 1, 1)
        elif self.pool_type == "max":
            out = res["max"].reshape(N, C, 1, 1)
        elif self.pool_type == "avgmax":
            avg = res["avg"].astype(jnp.float32)
            mx = res["max"].astype(jnp.float32)
            out = (0.5 * (avg + mx)).astype(x.dtype).reshape(N, C, 1, 1)
        else:  # catavgmax
            avg = res["avg"].reshape(N, C, 1, 1)
            mx = res["max"].reshape(N, C, 1, 1)
            out = jnp.concatenate((avg, mx), axis=1)

        if self.flatten:
            return out.reshape(out.shape[0], -1)
        return out

    def __repr__(self):
        return (self.__class__.__name__ + " (output_size=" + str(self.output_size)
                + ", pool_type=" + self.pool_type + ")")


def _reference(x, pool_type, flatten):
    avg = jnp.mean(x, axis=(2, 3), keepdims=True)
    mx = jnp.max(x, axis=(2, 3), keepdims=True)
    if pool_type == "avg":
        out = avg
    elif pool_type == "max":
        out = mx
    elif pool_type == "avgmax":
        out = 0.5 * (avg + mx)
    else:
        out = jnp.concatenate((avg, mx), axis=1)
    if flatten:
        out = out.reshape(out.shape[0], -1)
    return out.astype(x.dtype)


if __name__ == "__main__":
    key = jax.random.PRNGKey(0)
    ok = True
    # Aligned shape + a ragged shape that exercises row/HW padding and the
    # masked-max path (shifted negative so zero-padding would corrupt the max).
    for si, (shape, shift) in enumerate((((2, 4, 16, 16), 0.0), ((2, 3, 7, 9), -5.0))):
        x = jax.random.normal(jax.random.fold_in(key, si), shape,
                              dtype=jnp.float32) + shift
        for pool_type in ("avg", "max", "avgmax", "catavgmax"):
            for flatten in (False, True):
                mod = SelectiveAdaptivePool2d(output_size=1, pool_type=pool_type,
                                              flatten=flatten)
                out = jax.block_until_ready(mod(x))
                ref = _reference(x, pool_type, flatten)
                if out.shape != ref.shape or not jnp.allclose(out, ref, atol=1e-5,
                                                              rtol=1e-5):
                    ok = False
                    print("MISMATCH", shape, pool_type, flatten)

    if ok:
        print("KERNEL_OK")
</pallas_src>

<mosaic_0001>
module attributes {stable_mosaic.version = 11 : i64} {
  func.func @kernel(%arg0: i32, %arg1: i32, %arg2: memref<8x256xf32, #tpu.memory_space<vmem>>, %arg3: memref<8x1xf32, #tpu.memory_space<vmem>>, %arg4: memref<8x1xf32, #tpu.memory_space<vmem>>) attributes {dimension_semantics = [#tpu.dimension_semantics<parallel>, #tpu.dimension_semantics<arbitrary>], iteration_bounds = array<i64: 1, 1>, scalar_prefetch = 0 : i64, scratch_operands = 1 : i64, tpu.core_type = #tpu.core_type<tc>, window_params = [{transform_indices = @transform_0, window_bounds = array<i64: 8, 256>}, {transform_indices = @transform_1, window_bounds = array<i64: 8, 1>}]} {
    %c0_i32 = arith.constant 0 : i32
    %0 = arith.cmpi eq, %arg1, %c0_i32 : i32
    %1 = arith.extui %0 : i1 to i32
    %c0_i32_0 = arith.constant 0 : i32
    %2 = arith.cmpi ne, %1, %c0_i32_0 : i32
    scf.if %2 {
      %cst_8 = arith.constant 0.000000e+00 : f32
      %12 = vector.broadcast %cst_8 : f32 to vector<8x1xf32>
      %c0_9 = arith.constant 0 : index
      %c0_10 = arith.constant 0 : index
      %13 = vector.load %arg4[%c0_9, %c0_10] : memref<8x1xf32, #tpu.memory_space<vmem>>, vector<8x1xf32>
      tpu.vector_store %arg4[%c0_9, %c0_10], %12 {strides = array<i32>} : memref<8x1xf32, #tpu.memory_space<vmem>>, vector<8x1xf32>,
    } else {
    }
    %c0 = arith.constant 0 : index
    %c0_1 = arith.constant 0 : index
    %3 = vector.load %arg2[%c0, %c0_1] : memref<8x256xf32, #tpu.memory_space<vmem>>, vector<8x256xf32>
    %c0_2 = arith.constant 0 : index
    %c0_3 = arith.constant 0 : index
    %4 = vector.load %arg4[%c0_2, %c0_3] : memref<8x1xf32, #tpu.memory_space<vmem>>, vector<8x1xf32>
    %cst = arith.constant dense<0.000000e+00> : vector<8xf32>
    %5 = vector.multi_reduction <add>, %3, %cst [1] : vector<8x256xf32> to vector<8xf32>
    %6 = vector.shape_cast %5 : vector<8xf32> to vector<8x1xf32>
    %7 = arith.addf %4, %6 : vector<8x1xf32>
    %c0_4 = arith.constant 0 : index
    %c0_5 = arith.constant 0 : index
    %8 = vector.load %arg4[%c0_4, %c0_5] : memref<8x1xf32, #tpu.memory_space<vmem>>, vector<8x1xf32>
    tpu.vector_store %arg4[%c0_4, %c0_5], %7 {strides = array<i32>} : memref<8x1xf32, #tpu.memory_space<vmem>>, vector<8x1xf32>,
    %c0_i32_6 = arith.constant 0 : i32
    %9 = arith.cmpi eq, %arg1, %c0_i32_6 : i32
    %10 = arith.extui %9 : i1 to i32
    %c0_i32_7 = arith.constant 0 : i32
    %11 = arith.cmpi ne, %10, %c0_i32_7 : i32
    scf.if %11 {
      %c0_8 = arith.constant 0 : index
      %c0_9 = arith.constant 0 : index
      %12 = vector.load %arg4[%c0_8, %c0_9] : memref<8x1xf32, #tpu.memory_space<vmem>>, vector<8x1xf32>
      %cst_10 = arith.constant 3.906250e-03 : f32
      %13 = vector.broadcast %cst_10 : f32 to vector<8x1xf32>
      %14 = arith.mulf %12, %13 : vector<8x1xf32>
      %c0_11 = arith.constant 0 : index
      %c0_12 = arith.constant 0 : index
      %15 = vector.load %arg3[%c0_11, %c0_12] : memref<8x1xf32, #tpu.memory_space<vmem>>, vector<8x1xf32>
      tpu.vector_store %arg3[%c0_11, %c0_12], %14 {strides = array<i32>} : memref<8x1xf32, #tpu.memory_space<vmem>>, vector<8x1xf32>,
    } else {
    }
    return
  }
  func.func @transform_0(%arg0: i32, %arg1: i32) -> (i32, i32) {
    %c0_i32 = arith.constant 0 : i32
    return %arg0, %arg1 : i32, i32
  }
  func.func @transform_1(%arg0: i32, %arg1: i32) -> (i32, i32) {
    %c0_i32 = arith.constant 0 : i32
    %c0_i32_0 = arith.constant 0 : i32
    return %arg0, %c0_i32 : i32, i32
  }
}

</mosaic_0001>

<bundles_post_ra>
// kernel: tpu_custom_call.1
= control target key start
LH: loop header
LB: loop body
LE: loop exit
PB: predicated region body
PF: predicated region fallthrough
CT: control target
= control target key end

     0   :  { %6 = vsyncpa [#allocation4], 0  ;;  %s70_s6 = smov [#allocation3]   ;;  %s88_s0 = inlined_call_operand.hbm [shape: f32[8,256], index: 0, kind: input, shape index: {}]   ;;  %s89_s1 = inlined_call_operand.vmem [shape: f32[8,1], index: 1, kind: output, shape index: {}]  }
   0x1   :  { %s13_s7 = sshll.u32 %s70_s6, 4  ;;  %s14_s7 = int_to_ptr.vmem [resolvable:$true] %s13_s7 }
   0x2   :  { %s56_s8 = scalar_lea.vmem %s14_s7, 256  ;;  %p61_p1 = scmp.lt.s32.totalorder %s14_s7, %s14_s7 }
   0x3   :  { %p57_p0 = scmp.ne.s32.totalorder %s14_s7, %s56_s8  ;;  %p62_p2 = scmp.lt.s32.totalorder %s56_s8, %s56_s8 }
   0x5   :  { %p63_p3 = por %p62_p2, %p61_p1 }
   0x7   :  { %p64_p4 = pnand %p63_p3, %p57_p0 }
   0x9   :  { %67 = shalt.err (!%p64_p4)
}
   0xa   :  { %16 = dma.hbm_to_vmem [thread:$0]  %s88_s0, 256, %s14_s7, [#allocation4]  }
   0xb   :  { %68 = dma.done.wait [#allocation4], 256  }
   0xc   :  { %69 = vsyncadd [#allocation4], 4294967040  ;;  %vm24_vm0 = vcmask 7168   ;;  %v71_v0 = vmov 0.0   ;;  %v26_v1 = vld [vmem:[#allocation3] sm:$0xff]  ;;  %v27_v2 = vld [vmem:[#allocation3 + $0x8] sm:$0xff] }
   0xd   :  { %25 = vst.msk [vmem:[#allocation2] sm:$0xff] %vm24_vm0, %v71_v0  ;;  %v29_v3 = vadd.f32 %v27_v2, %v26_v1 }
   0xf   :  { %30 = vadd.xlane.f32.xlu0 %v29_v3 }
  0x14   :  { %v28_v4 = vld [vmem:[#allocation2] sm:$0xff] }
  0x98   :  { %v31_v5 = vpop.xlane.xlu0 %30 }
  0x99   :  { %v32_v6 = vadd.f32 %v31_v5, %v28_v4 }
  0x9b   :  { %34 = vst.msk [vmem:[#allocation2] sm:$0xff] %vm24_vm0, %v32_v6 }
  0xa2   :  { %v38_v7 = vld [vmem:[#allocation2] sm:$0xff] }
  0xa3   :  { %v39_v8 = vmul.f32 0.00390625, %v38_v7 }
  0xa5   :  { %40 = vst.msk [vmem:[%s89_s1] sm:$0xff] %vm24_vm0, %v39_v8 }
  0xa6   :  { %45 = vsyncpa [#allocation4], 1 }

</bundles_post_ra>
